<compile_context>
chip_gen: v7x
topology: tpu7x:2x2x1
jax: 0.10.0
libtpu: 0.0.40
codegen_flags: <defaults>
</compile_context>

<pallas_src>
import jax
import jax.numpy as jnp
from jax.experimental import pallas as pl
from jax.experimental.pallas import tpu as pltpu


def _round_up(v: int, m: int) -> int:
    return ((v + m - 1) // m) * m


def concat_linear_kernel(x_ref, wx_ref, t_ref, wt_ref, b_ref, o_ref, acc_ref):
    k = pl.program_id(2)

    @pl.when(k == 0)
    def _():
        acc_ref[...] = jnp.zeros_like(acc_ref)

    # MXU: accumulate this K tile in f32.
    acc_ref[...] += jnp.dot(
        x_ref[...], wx_ref[...], preferred_element_type=jnp.float32
    )

    @pl.when(k == pl.num_programs(2) - 1)
    def _():
        # Epilogue (f32 on the VPU): the concatenated t column becomes a
        # rank-1 update t (tm,1) * w_t (1,tn), plus the bias.
        y = (
            acc_ref[...]
            + t_ref[...].astype(jnp.float32) * wt_ref[...].astype(jnp.float32)
            + b_ref[...].astype(jnp.float32)
        )
        o_ref[...] = y.astype(o_ref.dtype)


def concat_linear(t, x, w, b, *, tm=256, tn=256, tk=256, compute_dtype=None):
    """ConcatLinear forward.

    t: (B,)            per-row scalar conditioner
    x: (B, d_in)
    w: (d_in + 1, d_out)   transpose of torch nn.Linear.weight; row 0 is the t column
    b: (d_out,)
    returns (B, d_out) == concat([t[:, None], x], 1) @ w + b
    """
    B, d_in = x.shape
    d_out = w.shape[1]
    assert w.shape[0] == d_in + 1, "weight must be (d_in + 1, d_out)"

    # Tile sizes: multiples of 128, capped to the (padded) problem size.
    tm = min(tm, _round_up(B, 128))
    tn = min(tn, _round_up(d_out, 128))
    tk = min(tk, _round_up(d_in, 128))

    B_pad = _round_up(B, tm)
    N_pad = _round_up(d_out, tn)
    K_pad = _round_up(d_in, tk)

    f32 = jnp.float32
    # Zero-padding keeps the math exact: padded K rows/cols contribute 0,
    # padded output rows/cols are sliced off below.
    x_p = jnp.pad(x, ((0, B_pad - B), (0, K_pad - d_in)))
    t_p = jnp.pad(t.reshape(B, 1).astype(f32), ((0, B_pad - B), (0, 0)))
    wx_p = jnp.pad(w[1:], ((0, K_pad - d_in), (0, N_pad - d_out)))
    wt_p = jnp.pad(w[:1].astype(f32), ((0, 0), (0, N_pad - d_out)))
    b_p = jnp.pad(b.reshape(1, d_out).astype(f32), ((0, 0), (0, N_pad - d_out)))

    if compute_dtype is not None:
        # bf16 MXU inputs (v6e / v7x); accumulation stays f32 in the kernel.
        x_p = x_p.astype(compute_dtype)
        wx_p = wx_p.astype(compute_dtype)

    grid = (B_pad // tm, N_pad // tn, K_pad // tk)

    out = pl.pallas_call(
        concat_linear_kernel,
        out_shape=jax.ShapeDtypeStruct((B_pad, N_pad), x.dtype),
        grid_spec=pltpu.PrefetchScalarGridSpec(
            num_scalar_prefetch=0,
            grid=grid,
            in_specs=[
                pl.BlockSpec((tm, tk), lambda i, j, k: (i, k)),   # x tile
                pl.BlockSpec((tk, tn), lambda i, j, k: (k, j)),   # w[1:] tile
                pl.BlockSpec((tm, 1), lambda i, j, k: (i, 0)),    # t column
                pl.BlockSpec((1, tn), lambda i, j, k: (0, j)),    # w[0:1] row
                pl.BlockSpec((1, tn), lambda i, j, k: (0, j)),    # bias row
            ],
            out_specs=pl.BlockSpec((tm, tn), lambda i, j, k: (i, j)),
            scratch_shapes=[pltpu.VMEM((tm, tn), jnp.float32)],
        ),
        compiler_params=pltpu.CompilerParams(
            dimension_semantics=("parallel", "parallel", "arbitrary"),
            vmem_limit_bytes=48 * 1024 * 1024,
        ),
    )(x_p, wx_p, t_p, wt_p, b_p)

    return out[:B, :d_out]


if __name__ == "__main__":
    # Small shapes consistent with the module: ConcatLinear(dim_in=32, dim_out=64)
    B, d_in, d_out = 16, 32, 64

    key = jax.random.PRNGKey(0)
    kt, kx, kw, kb = jax.random.split(key, 4)

    # Deterministic params mimicking nn.Linear init (uniform +/- 1/sqrt(fan_in)).
    bound = 1.0 / ((d_in + 1) ** 0.5)
    w = jax.random.uniform(kw, (d_in + 1, d_out), jnp.float32, -bound, bound)
    b = jax.random.uniform(kb, (d_out,), jnp.float32, -bound, bound)
    x = jax.random.normal(kx, (B, d_in), jnp.float32)
    t = jax.random.normal(kt, (B,), jnp.float32)

    # f32 path.
    out = concat_linear(t, x, w, b)
    jax.block_until_ready(out)

    # Pure-JAX reference matching the PyTorch forward exactly.
    ttx = jnp.concatenate([t[:, None], x], axis=1)
    ref = jnp.dot(ttx, w, precision=jax.lax.Precision.HIGHEST) + b
    assert out.shape == (B, d_out)
    assert jnp.allclose(out, ref, atol=1e-4, rtol=1e-4)

    # bf16 MXU-input path (v6e / v7x feedback); f32 accumulation, loose tol.
    out_bf16 = concat_linear(t, x, w, b, compute_dtype=jnp.bfloat16)
    jax.block_until_ready(out_bf16)
    assert out_bf16.shape == (B, d_out)
    assert jnp.allclose(out_bf16, ref, atol=1e-1, rtol=1e-1)

    print("KERNEL_OK")
</pallas_src>

<mosaic_0001>
module attributes {stable_mosaic.version = 11 : i64} {
  func.func @concat_linear_kernel(%arg0: i32, %arg1: i32, %arg2: i32, %arg3: memref<128x128xf32, #tpu.memory_space<vmem>>, %arg4: memref<128x128xf32, #tpu.memory_space<vmem>>, %arg5: memref<128x1xf32, #tpu.memory_space<vmem>>, %arg6: memref<1x128xf32, #tpu.memory_space<vmem>>, %arg7: memref<1x128xf32, #tpu.memory_space<vmem>>, %arg8: memref<128x128xf32, #tpu.memory_space<vmem>>, %arg9: memref<128x128xf32, #tpu.memory_space<vmem>>) attributes {dimension_semantics = [#tpu.dimension_semantics<parallel>, #tpu.dimension_semantics<parallel>, #tpu.dimension_semantics<arbitrary>], iteration_bounds = array<i64: 1, 1, 1>, scalar_prefetch = 0 : i64, scratch_operands = 1 : i64, tpu.core_type = #tpu.core_type<tc>, window_params = [{transform_indices = @transform_0, window_bounds = array<i64: 128, 128>}, {transform_indices = @transform_1, window_bounds = array<i64: 128, 128>}, {transform_indices = @transform_2, window_bounds = array<i64: 128, 1>}, {transform_indices = @transform_3, window_bounds = array<i64: 1, 128>}, {transform_indices = @transform_4, window_bounds = array<i64: 1, 128>}, {transform_indices = @transform_5, window_bounds = array<i64: 128, 128>}]} {
    %c0_i32 = arith.constant 0 : i32
    %0 = arith.cmpi eq, %arg2, %c0_i32 : i32
    %1 = arith.extui %0 : i1 to i32
    %c0_i32_0 = arith.constant 0 : i32
    %2 = arith.cmpi ne, %1, %c0_i32_0 : i32
    scf.if %2 {
      %cst_10 = arith.constant 0.000000e+00 : f32
      %12 = vector.broadcast %cst_10 : f32 to vector<128x128xf32>
      %c0_11 = arith.constant 0 : index
      %c0_12 = arith.constant 0 : index
      %13 = vector.load %arg9[%c0_11, %c0_12] : memref<128x128xf32, #tpu.memory_space<vmem>>, vector<128x128xf32>
      tpu.vector_store %arg9[%c0_11, %c0_12], %12 {strides = array<i32>} : memref<128x128xf32, #tpu.memory_space<vmem>>, vector<128x128xf32>,
    } else {
    }
    %c0 = arith.constant 0 : index
    %c0_1 = arith.constant 0 : index
    %3 = vector.load %arg9[%c0, %c0_1] : memref<128x128xf32, #tpu.memory_space<vmem>>, vector<128x128xf32>
    %c0_2 = arith.constant 0 : index
    %c0_3 = arith.constant 0 : index
    %4 = vector.load %arg3[%c0_2, %c0_3] : memref<128x128xf32, #tpu.memory_space<vmem>>, vector<128x128xf32>
    %c0_4 = arith.constant 0 : index
    %c0_5 = arith.constant 0 : index
    %5 = vector.load %arg4[%c0_4, %c0_5] : memref<128x128xf32, #tpu.memory_space<vmem>>, vector<128x128xf32>
    %cst = arith.constant dense<0.000000e+00> : vector<128x128xf32>
    %6 = tpu.matmul %4, %5, %cst {dimension_numbers = #tpu.dot_dimension_numbers<[1], [0], [0], [1], [0, 0, 1, 1], [], []>} : vector<128x128xf32>, vector<128x128xf32>, vector<128x128xf32> -> vector<128x128xf32>
    %7 = arith.addf %3, %6 : vector<128x128xf32>
    %c0_6 = arith.constant 0 : index
    %c0_7 = arith.constant 0 : index
    %8 = vector.load %arg9[%c0_6, %c0_7] : memref<128x128xf32, #tpu.memory_space<vmem>>, vector<128x128xf32>
    tpu.vector_store %arg9[%c0_6, %c0_7], %7 {strides = array<i32>} : memref<128x128xf32, #tpu.memory_space<vmem>>, vector<128x128xf32>,
    %c0_i32_8 = arith.constant 0 : i32
    %9 = arith.cmpi eq, %arg2, %c0_i32_8 : i32
    %10 = arith.extui %9 : i1 to i32
    %c0_i32_9 = arith.constant 0 : i32
    %11 = arith.cmpi ne, %10, %c0_i32_9 : i32
    scf.if %11 {
      %c0_10 = arith.constant 0 : index
      %c0_11 = arith.constant 0 : index
      %12 = vector.load %arg9[%c0_10, %c0_11] : memref<128x128xf32, #tpu.memory_space<vmem>>, vector<128x128xf32>
      %c0_12 = arith.constant 0 : index
      %c0_13 = arith.constant 0 : index
      %13 = vector.load %arg5[%c0_12, %c0_13] : memref<128x1xf32, #tpu.memory_space<vmem>>, vector<128x1xf32>
      %c0_14 = arith.constant 0 : index
      %c0_15 = arith.constant 0 : index
      %14 = vector.load %arg6[%c0_14, %c0_15] : memref<1x128xf32, #tpu.memory_space<vmem>>, vector<1x128xf32>
      %15 = vector.broadcast %13 : vector<128x1xf32> to vector<128x128xf32>
      %16 = vector.broadcast %14 : vector<1x128xf32> to vector<128x128xf32>
      %17 = arith.mulf %15, %16 : vector<128x128xf32>
      %18 = arith.addf %12, %17 : vector<128x128xf32>
      %c0_16 = arith.constant 0 : index
      %c0_17 = arith.constant 0 : index
      %19 = vector.load %arg7[%c0_16, %c0_17] : memref<1x128xf32, #tpu.memory_space<vmem>>, vector<1x128xf32>
      %20 = vector.broadcast %19 : vector<1x128xf32> to vector<128x128xf32>
      %21 = arith.addf %18, %20 : vector<128x128xf32>
      %c0_18 = arith.constant 0 : index
      %c0_19 = arith.constant 0 : index
      %22 = vector.load %arg8[%c0_18, %c0_19] : memref<128x128xf32, #tpu.memory_space<vmem>>, vector<128x128xf32>
      tpu.vector_store %arg8[%c0_18, %c0_19], %21 {strides = array<i32>} : memref<128x128xf32, #tpu.memory_space<vmem>>, vector<128x128xf32>,
    } else {
    }
    return
  }
  func.func @transform_0(%arg0: i32, %arg1: i32, %arg2: i32) -> (i32, i32) {
    %c0_i32 = arith.constant 0 : i32
    return %arg0, %arg2 : i32, i32
  }
  func.func @transform_1(%arg0: i32, %arg1: i32, %arg2: i32) -> (i32, i32) {
    %c0_i32 = arith.constant 0 : i32
    return %arg2, %arg1 : i32, i32
  }
  func.func @transform_2(%arg0: i32, %arg1: i32, %arg2: i32) -> (i32, i32) {
    %c0_i32 = arith.constant 0 : i32
    %c0_i32_0 = arith.constant 0 : i32
    return %arg0, %c0_i32 : i32, i32
  }
  func.func @transform_3(%arg0: i32, %arg1: i32, %arg2: i32) -> (i32, i32) {
    %c0_i32 = arith.constant 0 : i32
    %c0_i32_0 = arith.constant 0 : i32
    return %c0_i32, %arg1 : i32, i32
  }
  func.func @transform_4(%arg0: i32, %arg1: i32, %arg2: i32) -> (i32, i32) {
    %c0_i32 = arith.constant 0 : i32
    %c0_i32_0 = arith.constant 0 : i32
    return %c0_i32, %arg1 : i32, i32
  }
  func.func @transform_5(%arg0: i32, %arg1: i32, %arg2: i32) -> (i32, i32) {
    %c0_i32 = arith.constant 0 : i32
    return %arg0, %arg1 : i32, i32
  }
}

</mosaic_0001>

<bundles_post_ra>
// kernel: tpu_custom_call.1
= control target key start
LH: loop header
LB: loop body
LE: loop exit
PB: predicated region body
PF: predicated region fallthrough
CT: control target
= control target key end

     0   :  { %10 = vsyncpa [#allocation4], 0  ;;  %s892_s0 = inlined_call_operand.vmem [shape: f32[128,128], index: 0, kind: input, shape index: {}]   ;;  %s893_s1 = inlined_call_operand.hbm [shape: f32[128,128], index: 1, kind: input, shape index: {}]   ;;  %s894_s2 = inlined_call_operand.vmem [shape: f32[128,1], index: 2, kind: input, shape index: {}]   ;;  %s895_s3 = inlined_call_operand.vmem [shape: f32[1,128], index: 3, kind: input, shape index: {}]   ;;  %s896_s4 = inlined_call_operand.vmem [shape: f32[1,128], index: 4, kind: input, shape index: {}]   ;;  %s897_s5 = inlined_call_operand.hbm [shape: f32[128,128], index: 5, kind: output, shape index: {}]  }
   0x1   :  { %11 = vsyncpa [#allocation5], 0  ;;  %s683_s18 = smov [#allocation3]   ;;  %s635_s22 = scalar_lea.hbm %s893_s1, 2048 }
   0x2   :  { %s19_s19 = sshll.u32 %s683_s18, 4  ;;  %p636_p0 = scmp.ne.s32.totalorder %s893_s1, %s635_s22  ;;  %s20_s19 = int_to_ptr.vmem [resolvable:$true] %s19_s19 }
   0x3   :  { %p639_p1 = scmp.lt.u32.totalorder %s635_s22, %s893_s1 }
   0x5   :  { %p641_p2 = pnand %p639_p1, %p636_p0 }
   0x7   :  { %644 = shalt.err (!%p641_p2)
}
   0x8   :  { %s645_s27 = scalar_lea.vmem %s20_s19, 2048  ;;  %p650_p4 = scmp.lt.s32.totalorder %s20_s19, %s20_s19 }
   0x9   :  { %p646_p3 = scmp.ne.s32.totalorder %s20_s19, %s645_s27  ;;  %p651_p5 = scmp.lt.s32.totalorder %s645_s27, %s645_s27 }
   0xb   :  { %p652_p6 = por %p651_p5, %p650_p4 }
   0xd   :  { %p653_p7 = pnand %p652_p6, %p646_p3 }
   0xf   :  { %656 = shalt.err (!%p653_p7)
}
  0x10   :  { %s684_s28 = smov 128   ;;  %s685_s29 = smov 8  }
  0x11   :  { %25 = dma.hbm_to_vmem [thread:$0]  %s893_s1, 2048, %s20_s19, [#allocation4], %s684_s28, %s684_s28, %s685_s29  }
  0x12   :  { %679 = dma.done.wait [#allocation4], 2048  }
  0x13   :  { %680 = vsyncadd [#allocation4], 4294965248  ;;  %v686_v0 = vmov 0   ;;  %v87_v1 = vld [vmem:[#allocation3] sm:$0xff]  ;;  %v88_v2 = vld [vmem:[#allocation3 + $0x8] sm:$0xff] }
  0x14   :  { %634 = vset.pattern.permute.xlu1 %v686_v0  ;;  %633 = vset.pattern.permute.xlu0 %v686_v0  ;;  %v89_v3 = vld [vmem:[#allocation3 + $0x10] sm:$0xff]  ;;  %v580_v4 = vpack.c.bf16 %v88_v2, %v87_v1  ;;  %v90_v5 = vld [vmem:[#allocation3 + $0x18] sm:$0xff]  ;;  %v91_v7 = vld [vmem:[#allocation3 + $0x20] sm:$0xff] }
  0x15   :  { %v584_v6 = vpack.c.bf16 %v90_v5, %v89_v3  ;;  %v92_v8 = vld [vmem:[#allocation3 + $0x28] sm:$0xff]  ;;  %v71_v10 = vld [vmem:[%s892_s0] sm:$0xff]  ;;  %v93_v12 = vld [vmem:[#allocation3 + $0x30] sm:$0xff] }
  0x16   :  { %581 = vmatprep.subr.bf16.mxu0 %v580_v4  ;;  %612 = vmatprep.subr.bf16.mxu1 %v580_v4  ;;  %v588_v9 = vpack.c.bf16 %v92_v8, %v91_v7  ;;  %v79_v11 = vld [vmem:[%s892_s0 + $0x40] sm:$0xff]  ;;  %v94_v13 = vld [vmem:[#allocation3 + $0x38] sm:$0xff]  ;;  %v96_v16 = vld [vmem:[#allocation3 + $0x48] sm:$0xff] }
  0x17   :  { %583 = vmatpush3.bf16.msra.mxu0 %v580_v4  ;;  %620 = vmatpush3.bf16.msra.mxu1 %v580_v4  ;;  %v592_v14 = vpack.c.bf16 %v94_v13, %v93_v12  ;;  %v95_v15 = vld [vmem:[#allocation3 + $0x40] sm:$0xff]  ;;  %v301_v17 = vld [vmem:[%s894_s2 + $0x10] sm:$0xff]  ;;  %v302_v19 = vld [vmem:[%s894_s2 + $0x18] sm:$0xff] }
  0x18   :  { %585 = vmatprep.subr.bf16.mxu0 %v584_v6  ;;  %613 = vmatprep.subr.bf16.mxu1 %v584_v6  ;;  %v299_v18 = vld [vmem:[%s894_s2] sm:$0xff]  ;;  %v596_v20 = vpack.c.bf16 %v96_v16, %v95_v15  ;;  %v97_v21 = vld [vmem:[#allocation3 + $0x50] sm:$0xff]  ;;  %v98_v22 = vld [vmem:[#allocation3 + $0x58] sm:$0xff] }
  0x19   :  { %556 = vmatprep.mubr.f32.mxu0 %v71_v10  ;;  %568 = vmatprep.mubr.f32.mxu1 %v79_v11  ;;  %v300_v23 = vld [vmem:[%s894_s2 + $0x8] sm:$0xff]  ;;  %v600_v25 = vpack.c.bf16 %v98_v22, %v97_v21  ;;  %v99_v26 = vld [vmem:[#allocation3 + $0x60] sm:$0xff]  ;;  %v306_v29 = vld [vmem:[%s894_s2 + $0x38] sm:$0xff] }
  0x1a   :  { %328 = vperm.xlu1 %634, %v301_v17   ;;  %318 = vperm.xlu0 %633, %v299_v18   ;;  %v304_v24 = vld [vmem:[%s894_s2 + $0x28] sm:$0xff]  ;;  %v303_v28 = vld [vmem:[%s894_s2 + $0x20] sm:$0xff]  ;;  %v101_v31 = vld [vmem:[#allocation3 + $0x70] sm:$0xff] }
  0x1b   :  { %587 = vmatpush3.bf16.msra.mxu0 %v584_v6  ;;  %621 = vmatpush3.bf16.msra.mxu1 %v584_v6  ;;  %v100_v27 = vld [vmem:[#allocation3 + $0x68] sm:$0xff]  ;;  %v102_v32 = vld [vmem:[#allocation3 + $0x78] sm:$0xff]  ;;  %v305_v33 = vld [vmem:[%s894_s2 + $0x30] sm:$0xff] }
  0x1c   :  { %589 = vmatprep.subr.bf16.mxu0 %v588_v9  ;;  %614 = vmatprep.subr.bf16.mxu1 %v588_v9  ;;  %v604_v30 = vpack.c.bf16 %v100_v27, %v99_v26  ;;  %v308_v34 = vld [vmem:[%s894_s2 + $0x48] sm:$0xff]  ;;  %v608_v35 = vpack.c.bf16 %v102_v32, %v101_v31  ;;  %v307_v36 = vld [vmem:[%s894_s2 + $0x40] sm:$0xff]  ;;  %v310_v37 = vld [vmem:[%s894_s2 + $0x58] sm:$0xff] }
  0x1d   :  { %v309_v38 = vld [vmem:[%s894_s2 + $0x50] sm:$0xff]  ;;  %v72_v39 = vld [vmem:[%s892_s0 + $0x8] sm:$0xff]  ;;  %v311_v44 = vld [vmem:[%s894_s2 + $0x60] sm:$0xff] }
  0x1e   :  { %333 = vperm.xlu1 %634, %v302_v19   ;;  %323 = vperm.xlu0 %633, %v300_v23   ;;  %v80_v40 = vld [vmem:[%s892_s0 + $0x48] sm:$0xff]  ;;  %v73_v41 = vld [vmem:[%s892_s0 + $0x10] sm:$0xff]  ;;  %v74_v45 = vld [vmem:[%s892_s0 + $0x18] sm:$0xff] }
  0x1f   :  { %591 = vmatpush3.bf16.msra.mxu0 %v588_v9  ;;  %622 = vmatpush3.bf16.msra.mxu1 %v588_v9  ;;  %v81_v42 = vld [vmem:[%s892_s0 + $0x50] sm:$0xff]  ;;  %v312_v43 = vld [vmem:[%s894_s2 + $0x68] sm:$0xff]  ;;  %v82_v46 = vld [vmem:[%s892_s0 + $0x58] sm:$0xff] }
  0x20   :  { %593 = vmatprep.subr.bf16.mxu0 %v592_v14  ;;  %615 = vmatprep.subr.bf16.mxu1 %v592_v14  ;;  %v75_v47 = vld [vmem:[%s892_s0 + $0x20] sm:$0xff]  ;;  %v314_v49 = vld [vmem:[%s894_s2 + $0x78] sm:$0xff]  ;;  %v313_v50 = vld [vmem:[%s894_s2 + $0x70] sm:$0xff] }
  0x21   :  { %v83_v48 = vld [vmem:[%s892_s0 + $0x60] sm:$0xff]  ;;  %v76_v51 = vld [vmem:[%s892_s0 + $0x28] sm:$0xff]  ;;  %v77_v53 = vld [vmem:[%s892_s0 + $0x30] sm:$0xff] }
  0x22   :  { %343 = vperm.xlu1 %634, %v304_v24   ;;  %338 = vperm.xlu0 %633, %v303_v28   ;;  %v84_v52 = vld [vmem:[%s892_s0 + $0x68] sm:$0xff]  ;;  %v85_v54 = vld [vmem:[%s892_s0 + $0x70] sm:$0xff]  ;;  %v78_v55 = vld [vmem:[%s892_s0 + $0x38] sm:$0xff] }
  0x23   :  { %595 = vmatpush3.bf16.msra.mxu0 %v592_v14  ;;  %623 = vmatpush3.bf16.msra.mxu1 %v592_v14  ;;  %v86_v56 = vld [vmem:[%s892_s0 + $0x78] sm:$0xff]  ;;  %v836_v5 = vld [vmem:[%s895_s3] ss:$0 sm:$0xff]  ;;  %s687_s3 = smov [#allocation6]  }
  0x24   :  { %597 = vmatprep.subr.bf16.mxu0 %v596_v20  ;;  %616 = vmatprep.subr.bf16.mxu1 %v596_v20  ;;  %v845_v13 = vld [vmem:[%s896_s4] ss:$0 sm:$0xff]  ;;  %s478_s4 = sshll.u32 %s687_s3, 4  ;;  %s479_s4 = int_to_ptr.vmem [resolvable:$true] %s478_s4 }
  0x25   :  { %s657_s24 = scalar_lea.vmem %s479_s4, 2048  ;;  %p662_p9 = scmp.lt.s32.totalorder %s479_s4, %s479_s4 }
  0x26   :  { %353 = vperm.xlu1 %634, %v306_v29   ;;  %348 = vperm.xlu0 %633, %v305_v33   ;;  %p658_p8 = scmp.ne.s32.totalorder %s479_s4, %s657_s24  ;;  %p663_p10 = scmp.lt.s32.totalorder %s657_s24, %s657_s24 }
  0x27   :  { %599 = vmatpush3.bf16.msra.mxu0 %v596_v20  ;;  %624 = vmatpush3.bf16.msra.mxu1 %v596_v20 }
  0x28   :  { %601 = vmatprep.subr.bf16.mxu0 %v600_v25  ;;  %617 = vmatprep.subr.bf16.mxu1 %v600_v25  ;;  %p664_p11 = por %p663_p10, %p662_p9 }
  0x2a   :  { %363 = vperm.xlu1 %634, %v308_v34   ;;  %358 = vperm.xlu0 %633, %v307_v36   ;;  %p665_p12 = pnand %p664_p11, %p658_p8 }
  0x2b   :  { %603 = vmatpush3.bf16.msra.mxu0 %v600_v25  ;;  %625 = vmatpush3.bf16.msra.mxu1 %v600_v25 }
  0x2c   :  { %605 = vmatprep.subr.bf16.mxu0 %v604_v30  ;;  %618 = vmatprep.subr.bf16.mxu1 %v604_v30 }
  0x2e   :  { %373 = vperm.xlu1 %634, %v310_v37   ;;  %368 = vperm.xlu0 %633, %v309_v38  }
  0x2f   :  { %607 = vmatpush3.bf16.msra.mxu0 %v604_v30  ;;  %626 = vmatpush3.bf16.msra.mxu1 %v604_v30 }
  0x30   :  { %609 = vmatprep.subr.bf16.mxu0 %v608_v35  ;;  %619 = vmatprep.subr.bf16.mxu1 %v608_v35 }
  0x32   :  { %383 = vperm.xlu1 %634, %v312_v43   ;;  %378 = vperm.xlu0 %633, %v311_v44  }
  0x33   :  { %611 = vmatpush3.bf16.msra.mxu0 %v608_v35  ;;  %627 = vmatpush3.bf16.msra.mxu1 %v608_v35 }
  0x36   :  { %557 = vmatmul.mubr.f32.vlgmr.msra.gmra.mrb[0].mxu0 %v72_v39  ;;  %569 = vmatmul.mubr.f32.vlgmr.msra.gmra.mrb[0].mxu1 %v80_v40 }
  0x37   :  { %559 = vmatprep.mubr.f32.mxu0 %v73_v41  ;;  %571 = vmatprep.mubr.f32.mxu1 %v81_v42 }
  0x38   :  { %393 = vperm.xlu1 %634, %v314_v49   ;;  %388 = vperm.xlu0 %633, %v313_v50  }
  0x3a   :  { %560 = vmatmul.mubr.f32.gmra.mrb[2].mxu0 %v74_v45  ;;  %572 = vmatmul.mubr.f32.gmra.mrb[2].mxu1 %v82_v46 }
  0x3b   :  { %562 = vmatprep.mubr.f32.mxu0 %v75_v47  ;;  %574 = vmatprep.mubr.f32.mxu1 %v83_v48 }
  0x3e   :  { %563 = vmatmul.mubr.f32.gmra.mrb[4].mxu0 %v76_v51  ;;  %575 = vmatmul.mubr.f32.gmra.mrb[4].mxu1 %v84_v52 }
  0x3f   :  { %565 = vmatprep.mubr.f32.mxu0 %v77_v53  ;;  %577 = vmatprep.mubr.f32.mxu1 %v85_v54 }
  0x42   :  { %566 = vmatmul.mubr.f32.gmra.mrb[6].mxu0 %v78_v55  ;;  %578 = vmatmul.mubr.f32.gmra.mrb[6].mxu1 %v86_v56 }
  0x99   :  { %v329_v57 = vpop.permute.xlu1 %328  ;;  %v319_v58 = vpop.permute.xlu0 %318 }
  0x9a   :  { %v402_v10 = vmul.f32 %v836_v5, %v319_v58  ;;  %v404_v25 = vmul.f32 %v836_v5, %v329_v57 }
  0x9d   :  { %v334_v59 = vpop.permute.xlu1 %333  ;;  %v324_v60 = vpop.permute.xlu0 %323 }
  0x9e   :  { %v403_v6 = vmul.f32 %v836_v5, %v324_v60  ;;  %v405_v21 = vmul.f32 %v836_v5, %v334_v59 }
  0xa1   :  { %v344_v61 = vpop.permute.xlu1 %343  ;;  %v339_v62 = vpop.permute.xlu0 %338 }
  0xa2   :  { %v407_v37 = vmul.f32 %v836_v5, %v344_v61  ;;  %v406_v43 = vmul.f32 %v836_v5, %v339_v62 }
  0xa5   :  { %v829_v63 = vpop.permute.xlu1 %353  ;;  %v831_v0 = vpop.permute.xlu0 %348 }
  0xa6   :  { %v409_v55 = vmul.f32 %v836_v5, %v829_v63  ;;  %v408_v59 = vmul.f32 %v836_v5, %v831_v0 }
  0xa9   :  { %v364_v1 = vpop.permute.xlu1 %363  ;;  %v359_v2 = vpop.permute.xlu0 %358 }
  0xaa   :  { %v411_v7 = vmul.f32 %v836_v5, %v364_v1  ;;  %v410_v11 = vmul.f32 %v836_v5, %v359_v2 }
  0xad   :  { %v374_v3 = vpop.permute.xlu1 %373  ;;  %v369_v4 = vpop.permute.xlu0 %368 }
  0xae   :  { %v413_v22 = vmul.f32 %v836_v5, %v374_v3  ;;  %v412_v26 = vmul.f32 %v836_v5, %v369_v4 }
  0xb1   :  { %v384_v8 = vpop.permute.xlu1 %383  ;;  %v379_v9 = vpop.permute.xlu0 %378 }
  0xb2   :  { %v415_v38 = vmul.f32 %v836_v5, %v384_v8  ;;  %v414_v44 = vmul.f32 %v836_v5, %v379_v9 }
  0xb7   :  { %v394_v39 = vpop.permute.xlu1 %393  ;;  %v389_v40 = vpop.permute.xlu0 %388 }
  0xb8   :  { %v417_v56 = vmul.f32 %v836_v5, %v394_v39  ;;  %v416_v60 = vmul.f32 %v836_v5, %v389_v40 }
 0x109   :  { %v558_v12 = vpop.f32.mrb[0].mxu0  ;;  %v570_v14 = vpop.f32.mrb[0].mxu1 }
 0x10a   :  { %v419_v15 = vadd.f32 %v558_v12, %v403_v6  ;;  %v427_v16 = vadd.f32 %v570_v14, %v411_v7  ;;  %v169_v17 = vpop.f32.mrb[1].mxu0  ;;  %v209_v18 = vpop.f32.mrb[1].mxu1 }
 0x10b   :  { %v418_v19 = vadd.f32 %v402_v10, %v169_v17  ;;  %v426_v20 = vadd.f32 %v410_v11, %v209_v18 }
 0x10c   :  { %v442_v23 = vadd.f32 %v845_v13, %v419_v15  ;;  %v450_v24 = vadd.f32 %v845_v13, %v427_v16 }
 0x10d   :  { %v441_v27 = vadd.f32 %v845_v13, %v418_v19  ;;  %v449_v28 = vadd.f32 %v845_v13, %v426_v20  ;;  %v561_v29 = vpop.f32.mrb[2].mxu0  ;;  %v573_v30 = vpop.f32.mrb[2].mxu1 }
 0x10e   :  { %458 = vst [vmem:[#allocation6 + $0x8] sm:$0xff] %v442_v23  ;;  %466 = vst [vmem:[#allocation6 + $0x48] sm:$0xff] %v450_v24  ;;  %v421_v31 = vadd.f32 %v561_v29, %v405_v21  ;;  %v429_v32 = vadd.f32 %v573_v30, %v413_v22  ;;  %v179_v33 = vpop.f32.mrb[3].mxu0  ;;  %v219_v34 = vpop.f32.mrb[3].mxu1 }
 0x10f   :  { %457 = vst [vmem:[#allocation6] sm:$0xff] %v441_v27  ;;  %465 = vst [vmem:[#allocation6 + $0x40] sm:$0xff] %v449_v28  ;;  %v420_v35 = vadd.f32 %v404_v25, %v179_v33  ;;  %v428_v36 = vadd.f32 %v412_v26, %v219_v34 }
 0x110   :  { %v444_v41 = vadd.f32 %v845_v13, %v421_v31  ;;  %v452_v42 = vadd.f32 %v845_v13, %v429_v32 }
 0x111   :  { %v443_v45 = vadd.f32 %v845_v13, %v420_v35  ;;  %v451_v46 = vadd.f32 %v845_v13, %v428_v36  ;;  %v564_v47 = vpop.f32.mrb[4].mxu0  ;;  %v576_v48 = vpop.f32.mrb[4].mxu1 }
 0x112   :  { %460 = vst [vmem:[#allocation6 + $0x18] sm:$0xff] %v444_v41  ;;  %468 = vst [vmem:[#allocation6 + $0x58] sm:$0xff] %v452_v42  ;;  %v423_v49 = vadd.f32 %v564_v47, %v407_v37  ;;  %v431_v50 = vadd.f32 %v576_v48, %v415_v38  ;;  %v189_v51 = vpop.f32.mrb[5].mxu0  ;;  %v229_v52 = vpop.f32.mrb[5].mxu1 }
 0x113   :  { %459 = vst [vmem:[#allocation6 + $0x10] sm:$0xff] %v443_v45  ;;  %467 = vst [vmem:[#allocation6 + $0x50] sm:$0xff] %v451_v46  ;;  %v422_v53 = vadd.f32 %v406_v43, %v189_v51  ;;  %v430_v54 = vadd.f32 %v414_v44, %v229_v52 }
 0x114   :  { %v446_v57 = vadd.f32 %v845_v13, %v423_v49  ;;  %v454_v58 = vadd.f32 %v845_v13, %v431_v50 }
 0x115   :  { %v445_v61 = vadd.f32 %v845_v13, %v422_v53  ;;  %v453_v62 = vadd.f32 %v845_v13, %v430_v54  ;;  %v567_v1 = vpop.f32.mrb[6].mxu0  ;;  %v579_v2 = vpop.f32.mrb[6].mxu1 }
 0x116   :  { %462 = vst [vmem:[#allocation6 + $0x28] sm:$0xff] %v446_v57  ;;  %470 = vst [vmem:[#allocation6 + $0x68] sm:$0xff] %v454_v58  ;;  %v425_v63 = vadd.f32 %v567_v1, %v409_v55  ;;  %v433_v3 = vadd.f32 %v579_v2, %v417_v56  ;;  %v199_v4 = vpop.f32.mrb[7].mxu0  ;;  %v239_v6 = vpop.f32.mrb[7].mxu1 }
 0x117   :  { %461 = vst [vmem:[#allocation6 + $0x20] sm:$0xff] %v445_v61  ;;  %469 = vst [vmem:[#allocation6 + $0x60] sm:$0xff] %v453_v62  ;;  %v424_v7 = vadd.f32 %v408_v59, %v199_v4  ;;  %v432_v0 = vadd.f32 %v416_v60, %v239_v6 }
 0x118   :  { %v448_v5 = vadd.f32 %v845_v13, %v425_v63  ;;  %v456_v8 = vadd.f32 %v845_v13, %v433_v3 }
 0x119   :  { %v447_v9 = vadd.f32 %v845_v13, %v424_v7  ;;  %v455_v10 = vadd.f32 %v845_v13, %v432_v0 }
 0x11a   :  { %464 = vst [vmem:[#allocation6 + $0x38] sm:$0xff] %v448_v5  ;;  %472 = vst [vmem:[#allocation6 + $0x78] sm:$0xff] %v456_v8 }
 0x11b   :  { %463 = vst [vmem:[#allocation6 + $0x30] sm:$0xff] %v447_v9  ;;  %471 = vst [vmem:[#allocation6 + $0x70] sm:$0xff] %v455_v10 }
 0x11c   :  { %668 = shalt.err (!%p665_p12)
}
 0x11d   :  { %s669_s27 = scalar_lea.hbm %s897_s5, 2048 }
 0x11e   :  { %p670_p13 = scmp.ne.s32.totalorder %s897_s5, %s669_s27  ;;  %p673_p0 = scmp.lt.u32.totalorder %s669_s27, %s897_s5 }
 0x120   :  { %p675_p1 = pnand %p673_p0, %p670_p13 }
 0x122   :  { %678 = shalt.err (!%p675_p1)
}
 0x123   :  { %484 = dma.vmem_to_hbm [thread:$0]  %s479_s4, 2048, %s897_s5, [#allocation5], %s684_s28, %s684_s28, %s685_s29  }
 0x124   :  { %681 = dma.done.wait [#allocation5], 2048  }
 0x125   :  { %682 = vsyncadd [#allocation5], 4294965248 }
 0x126   :  { %488 = vsyncpa [#allocation4], 1 }
 0x127   :  { %489 = vsyncpa [#allocation5], 1 }

</bundles_post_ra>
